<compile_context>
chip_gen: v7x
topology: tpu7x:2x2x1
jax: 0.10.0
libtpu: 0.0.40
codegen_flags: <defaults>
</compile_context>

<pallas_src>
import functools
from typing import NamedTuple

import jax
import jax.numpy as jnp
from jax.experimental import pallas as pl
from jax.experimental.pallas import tpu as pltpu

LANE = 128      # lane width: lane-dense dims are padded to multiples of this
SUBLANE = 8


def _round_up(n, m):
    return ((n + m - 1) // m) * m


def _pad2d(a, rows, cols):
    return jnp.pad(a, ((0, rows - a.shape[0]), (0, cols - a.shape[1])))


def _hardswish(h):
    # x * clamp(x + 3, 0, 6) / 6 — kept in f32 on the VPU.
    return h * jnp.clip(h + 3.0, 0.0, 6.0) * (1.0 / 6.0)


def _largest_dividing_block(total, target):
    """Largest multiple of LANE that is <= target and divides `total` (a LANE multiple)."""
    target = max(LANE, min(total, (target // LANE) * LANE))
    for cand in range(target, LANE - 1, -LANE):
        if total % cand == 0:
            return cand
    return LANE


# ----------------------------------------------------------------------------
# Hardware / feature probes (cached, run once).
# ----------------------------------------------------------------------------
@functools.lru_cache(maxsize=None)
def _vmem_capacity_bytes():
    try:
        return int(pltpu.get_tpu_info().vmem_capacity_bytes)
    except Exception:
        return 64 * 1024 * 1024  # conservative fallback (v7x per-TC VMEM)


@functools.lru_cache(maxsize=None)
def _buffered1_supported():
    """Whether pipeline_mode=pl.Buffered(1) (single-buffered resident blocks) works."""
    try:
        def _copy(x_ref, o_ref):
            o_ref[...] = x_ref[...]

        x = jnp.zeros((8, 128), jnp.float32)
        out = pl.pallas_call(
            _copy,
            out_shape=jax.ShapeDtypeStruct((8, 128), jnp.float32),
            grid=(1,),
            in_specs=[pl.BlockSpec((8, 128), lambda i: (0, 0),
                                   pipeline_mode=pl.Buffered(1))],
            out_specs=pl.BlockSpec((8, 128), lambda i: (0, 0)),
        )(x)
        jax.block_until_ready(out)
        return True
    except Exception:
        return False


# ----------------------------------------------------------------------------
# Parameter preparation (one-time; hoisted out of the per-call forward path).
# ----------------------------------------------------------------------------
class FCNetParams(NamedTuple):
    w1: jax.Array        # (K, Hp)  bf16, hidden zero-padded to a multiple of 128
    b1: jax.Array        # (1, Hp)  f32
    w2: jax.Array        # (Hp, Np) bf16, classes zero-padded to a multiple of 128
    b2: jax.Array        # (1, Np)  f32
    num_classes: int


def prepare_params(w1, b1, w2, b2):
    K, H = w1.shape
    N = w2.shape[1]
    Hp = _round_up(H, LANE)
    Np = _round_up(N, LANE)
    w1_p = _pad2d(w1, K, Hp).astype(jnp.bfloat16)       # K left at full extent
    w2_p = _pad2d(w2, Hp, Np).astype(jnp.bfloat16)
    b1_p = _pad2d(jnp.asarray(b1, jnp.float32).reshape(1, -1), 1, Hp)
    b2_p = _pad2d(jnp.asarray(b2, jnp.float32).reshape(1, -1), 1, Np)
    return FCNetParams(w1_p, b1_p, w2_p, b2_p, int(N))


# ----------------------------------------------------------------------------
# Kernels.
# ----------------------------------------------------------------------------
def _make_kernel(num_h_blocks):
    if num_h_blocks == 1:
        # Resident-weights path: both matmuls + hardswish fused, no scratch.
        def kernel(x_ref, w1_ref, b1_ref, w2_ref, b2_ref, o_ref):
            h = jnp.dot(x_ref[...], w1_ref[...],
                        preferred_element_type=jnp.float32) + b1_ref[...]
            hs = _hardswish(h)
            out = jnp.dot(hs.astype(w2_ref.dtype), w2_ref[...],
                          preferred_element_type=jnp.float32)
            o_ref[...] = (out + b2_ref[...]).astype(o_ref.dtype)
        return kernel

    # Hidden-split path: accumulate fc2 partials over H blocks (P3 pattern).
    def kernel(x_ref, w1_ref, b1_ref, w2_ref, b2_ref, o_ref, acc_ref):
        h_idx = pl.program_id(2)

        @pl.when(h_idx == 0)
        def _():
            acc_ref[...] = jnp.zeros_like(acc_ref)

        h = jnp.dot(x_ref[...], w1_ref[...],
                    preferred_element_type=jnp.float32) + b1_ref[...]
        hs = _hardswish(h)
        acc_ref[...] += jnp.dot(hs.astype(w2_ref.dtype), w2_ref[...],
                                preferred_element_type=jnp.float32)

        @pl.when(h_idx == num_h_blocks - 1)
        def _():
            o_ref[...] = (acc_ref[...] + b2_ref[...]).astype(o_ref.dtype)
    return kernel


# ----------------------------------------------------------------------------
# Forward.
# ----------------------------------------------------------------------------
def fcnet_forward(x, params, *, block_m=None, block_h=None, block_n=None,
                  out_dtype=jnp.float32):
    """x: (B, input_size); params: FCNetParams from prepare_params()."""
    B, K = x.shape
    Kw, Hp = params.w1.shape
    Np = params.w2.shape[1]
    N = params.num_classes
    assert Kw == K, f"input_size mismatch: x has {K}, params expect {Kw}"

    vmem_cap = _vmem_capacity_bytes()
    vmem_budget = int(0.85 * vmem_cap)      # headroom for Mosaic internal scratch
    single_buf_ok = _buffered1_supported()

    # --- batch tiling --------------------------------------------------------
    # 256 rows fills the 2x256 MXU on v6e/v7x and is at the top of v5e's
    # recommended 128-256 range; small batches use one full-extent block
    # (block == full dim satisfies the (8,128) rule, so no batch padding).
    if block_m is None:
        block_m = 256 if B > 256 else B
    if block_m >= B:
        block_m, Bp = B, B
    else:
        block_m = _round_up(block_m, SUBLANE)
        Bp = _round_up(B, block_m)
    m_blocks = Bp // block_m

    # --- output-column tiling (optional N split) -----------------------------
    if block_n is None or block_n >= Np:
        block_n = Np
    else:
        block_n = _largest_dividing_block(Np, block_n)
    n_blocks = Np // block_n

    # --- hidden-dim tiling: keep weights resident if they fit, else split ----
    wfac = 1 if single_buf_ok else 2
    resident_bytes = wfac * ((K * Hp + Hp * Np) * 2 + (Hp + Np) * 4)
    if block_h is None:
        if resident_bytes <= 0.6 * vmem_budget:
            block_h = Hp
        else:
            block_h = _largest_dividing_block(Hp, 512)
            while block_h > LANE:
                step_bytes = 2 * ((K * block_h + block_h * block_n) * 2 + block_h * 4)
                if step_bytes <= 0.5 * vmem_budget:
                    break
                block_h = _largest_dividing_block(Hp, block_h - LANE)
    else:
        block_h = _largest_dividing_block(Hp, block_h)
    h_blocks = Hp // block_h

    # --- which operands are grid-constant (candidates for single-buffering) --
    x_res = m_blocks == 1
    w1_res = b1_res = h_blocks == 1
    w2_res = (h_blocks == 1 and n_blocks == 1)
    b2_res = n_blocks == 1

    def _spec(shape, index_map, resident):
        if resident and single_buf_ok:
            return pl.BlockSpec(shape, index_map, pipeline_mode=pl.Buffered(1))
        return pl.BlockSpec(shape, index_map)

    def _bufs(resident):
        return 1 if (resident and single_buf_ok) else 2

    # --- per-call input prep (weights were prepared once in prepare_params) --
    x_p = x.astype(jnp.bfloat16)
    if Bp != B:
        x_p = jnp.pad(x_p, ((0, Bp - B), (0, 0)))

    # --- VMEM budget: tiles + weights + inter-matmul activation + scratch ----
    out_itemsize = jnp.dtype(out_dtype).itemsize
    need = (_bufs(x_res) * block_m * K * 2
            + 2 * block_m * block_n * out_itemsize
            + _bufs(w1_res) * K * block_h * 2
            + _bufs(b1_res) * block_h * 4
            + _bufs(w2_res) * block_h * block_n * 2
            + _bufs(b2_res) * block_n * 4
            + block_m * block_h * 12                 # h(f32) + hs(f32) + bf16 copy
            + (block_m * block_n * 4 if h_blocks > 1 else 0)
            + (2 << 20))                             # slack for internal scratch
    vmem_limit = int(min(vmem_budget, max(need, 32 * 1024 * 1024)))

    flops = 2 * Bp * (K * Hp * n_blocks + Hp * Np)
    bytes_accessed = (Bp * K * 2 + (K * Hp + Hp * Np) * 2
                      + (Hp + Np) * 4 + Bp * Np * out_itemsize)

    scratch_shapes = ([pltpu.VMEM((block_m, block_n), jnp.float32)]
                      if h_blocks > 1 else [])

    out_p = pl.pallas_call(
        _make_kernel(h_blocks),
        out_shape=jax.ShapeDtypeStruct((Bp, Np), out_dtype),
        grid_spec=pltpu.PrefetchScalarGridSpec(
            num_scalar_prefetch=0,
            grid=(m_blocks, n_blocks, h_blocks),
            in_specs=[
                _spec((block_m, K), lambda i, j, h: (i, 0), x_res),         # x tile
                _spec((K, block_h), lambda i, j, h: (0, h), w1_res),        # W1
                _spec((1, block_h), lambda i, j, h: (0, h), b1_res),        # b1
                _spec((block_h, block_n), lambda i, j, h: (h, j), w2_res),  # W2
                _spec((1, block_n), lambda i, j, h: (0, j), b2_res),        # b2
            ],
            out_specs=pl.BlockSpec((block_m, block_n), lambda i, j, h: (i, j)),
            scratch_shapes=scratch_shapes,
        ),
        compiler_params=pltpu.CompilerParams(
            dimension_semantics=("parallel", "parallel", "arbitrary"),
            vmem_limit_bytes=vmem_limit,
        ),
        cost_estimate=pl.CostEstimate(
            flops=flops, transcendentals=0, bytes_accessed=bytes_accessed),
    )(x_p, params.w1, params.b1, params.w2, params.b2)

    # Drop any batch / class padding.
    return out_p[:B, :N]


# ----------------------------------------------------------------------------
# Reference + init.
# ----------------------------------------------------------------------------
def init_params(key, input_size, hidden_size, num_classes):
    """Deterministic init mimicking nn.Linear default: U(-1/sqrt(fan_in), +1/sqrt(fan_in))."""
    k1, k2, k3, k4 = jax.random.split(key, 4)
    bound1 = 1.0 / (input_size ** 0.5)
    bound2 = 1.0 / (hidden_size ** 0.5)
    w1 = jax.random.uniform(k1, (input_size, hidden_size), jnp.float32, -bound1, bound1)
    b1 = jax.random.uniform(k2, (1, hidden_size), jnp.float32, -bound1, bound1)
    w2 = jax.random.uniform(k3, (hidden_size, num_classes), jnp.float32, -bound2, bound2)
    b2 = jax.random.uniform(k4, (1, num_classes), jnp.float32, -bound2, bound2)
    return w1, b1, w2, b2


def reference_forward(x, w1, b1, w2, b2):
    """Same math as the kernel; pass bf16 operands to match kernel numerics."""
    h = (jnp.dot(x, w1, preferred_element_type=jnp.float32)
         + jnp.asarray(b1, jnp.float32).reshape(1, -1))
    hs = _hardswish(h)
    return (jnp.dot(hs.astype(w2.dtype), w2, preferred_element_type=jnp.float32)
            + jnp.asarray(b2, jnp.float32).reshape(1, -1))


if __name__ == "__main__":
    batch, input_size, hidden_size, num_classes = 8, 16, 32, 8

    key = jax.random.PRNGKey(0)
    kx, kp = jax.random.split(key)
    x = jax.random.normal(kx, (batch, input_size), jnp.float32)
    w1, b1, w2, b2 = init_params(kp, input_size, hidden_size, num_classes)
    params = prepare_params(w1, b1, w2, b2)

    # Resident-weights path.
    out = jax.block_until_ready(fcnet_forward(x, params))
    assert out.shape == (batch, num_classes)

    bf = jnp.bfloat16
    ref_matched = reference_forward(x.astype(bf), w1.astype(bf), b1, w2.astype(bf), b2)
    assert jnp.allclose(out, ref_matched, atol=1e-4, rtol=1e-4), "mismatch vs matched reference"

    ref_f32 = reference_forward(x, w1, b1, w2, b2)
    assert jnp.allclose(out, ref_f32, atol=0.25, rtol=0.1), "mismatch vs f32 reference"

    # Exercise the hidden-split accumulator path (auto-used when weights exceed VMEM).
    hidden2 = 256
    w1b, b1b, w2b, b2b = init_params(jax.random.PRNGKey(1), input_size, hidden2, num_classes)
    params2 = prepare_params(w1b, b1b, w2b, b2b)
    out2 = jax.block_until_ready(fcnet_forward(x, params2, block_h=128))
    assert out2.shape == (batch, num_classes)
    ref2 = reference_forward(x.astype(bf), w1b.astype(bf), b1b, w2b.astype(bf), b2b)
    assert jnp.allclose(out2, ref2, atol=1e-3, rtol=1e-3), "mismatch on split-H path"

    print("KERNEL_OK")
</pallas_src>

<mosaic_0001>
module attributes {stable_mosaic.version = 11 : i64} {
  func.func @_copy(%arg0: i32, %arg1: memref<8x128xf32, #tpu.memory_space<vmem>>, %arg2: memref<8x128xf32, #tpu.memory_space<vmem>>) attributes {dimension_semantics = [#tpu.dimension_semantics<arbitrary>], iteration_bounds = array<i64: 1>, scalar_prefetch = 0 : i64, scratch_operands = 0 : i64, tpu.core_type = #tpu.core_type<tc>, window_params = [{pipeline_mode = #tpu.pipeline_mode<synchronous>, transform_indices = @transform_0, window_bounds = array<i64: 8, 128>}, {pipeline_mode = #tpu.pipeline_mode<synchronous>, transform_indices = @transform_1, window_bounds = array<i64: 8, 128>}]} {
    %c0 = arith.constant 0 : index
    %c0_0 = arith.constant 0 : index
    %0 = vector.load %arg1[%c0, %c0_0] : memref<8x128xf32, #tpu.memory_space<vmem>>, vector<8x128xf32>
    %c0_1 = arith.constant 0 : index
    %c0_2 = arith.constant 0 : index
    %1 = vector.load %arg2[%c0_1, %c0_2] : memref<8x128xf32, #tpu.memory_space<vmem>>, vector<8x128xf32>
    tpu.vector_store %arg2[%c0_1, %c0_2], %0 {strides = array<i32>} : memref<8x128xf32, #tpu.memory_space<vmem>>, vector<8x128xf32>,
    return
  }
  func.func @transform_0(%arg0: i32) -> (i32, i32) {
    %c0_i32 = arith.constant 0 : i32
    %c0_i32_0 = arith.constant 0 : i32
    %c0_i32_1 = arith.constant 0 : i32
    return %c0_i32, %c0_i32_0 : i32, i32
  }
  func.func @transform_1(%arg0: i32) -> (i32, i32) {
    %c0_i32 = arith.constant 0 : i32
    %c0_i32_0 = arith.constant 0 : i32
    %c0_i32_1 = arith.constant 0 : i32
    return %c0_i32, %c0_i32_0 : i32, i32
  }
}

module attributes {stable_mosaic.version = 11 : i64} {
  func.func @kernel(%arg0: i32, %arg1: i32, %arg2: i32, %arg3: memref<8x16xbf16, #tpu.memory_space<vmem>>, %arg4: memref<16x128xbf16, #tpu.memory_space<vmem>>, %arg5: memref<1x128xf32, #tpu.memory_space<vmem>>, %arg6: memref<128x128xbf16, #tpu.memory_space<vmem>>, %arg7: memref<1x128xf32, #tpu.memory_space<vmem>>, %arg8: memref<8x128xf32, #tpu.memory_space<vmem>>) attributes {dimension_semantics = [#tpu.dimension_semantics<parallel>, #tpu.dimension_semantics<parallel>, #tpu.dimension_semantics<arbitrary>], iteration_bounds = array<i64: 1, 1, 1>, scalar_prefetch = 0 : i64, scratch_operands = 0 : i64, tpu.core_type = #tpu.core_type<tc>, window_params = [{transform_indices = @transform_0, window_bounds = array<i64: 8, 16>}, {transform_indices = @transform_1, window_bounds = array<i64: 16, 128>}, {transform_indices = @transform_2, window_bounds = array<i64: 1, 128>}, {transform_indices = @transform_3, window_bounds = array<i64: 128, 128>}, {transform_indices = @transform_4, window_bounds = array<i64: 1, 128>}, {transform_indices = @transform_5, window_bounds = array<i64: 8, 128>}]} {
    %c0 = arith.constant 0 : index
    %c0_0 = arith.constant 0 : index
    %0 = vector.load %arg3[%c0, %c0_0] : memref<8x16xbf16, #tpu.memory_space<vmem>>, vector<8x16xbf16>
    %c0_1 = arith.constant 0 : index
    %c0_2 = arith.constant 0 : index
    %1 = vector.load %arg4[%c0_1, %c0_2] : memref<16x128xbf16, #tpu.memory_space<vmem>>, vector<16x128xbf16>
    %cst = arith.constant dense<0.000000e+00> : vector<8x128xf32>
    %2 = tpu.matmul %0, %1, %cst {dimension_numbers = #tpu.dot_dimension_numbers<[1], [0], [0], [1], [0, 0, 1, 1], [], []>} : vector<8x16xbf16>, vector<16x128xbf16>, vector<8x128xf32> -> vector<8x128xf32>
    %c0_3 = arith.constant 0 : index
    %c0_4 = arith.constant 0 : index
    %3 = vector.load %arg5[%c0_3, %c0_4] : memref<1x128xf32, #tpu.memory_space<vmem>>, vector<1x128xf32>
    %4 = vector.broadcast %3 : vector<1x128xf32> to vector<8x128xf32>
    %5 = arith.addf %2, %4 : vector<8x128xf32>
    %cst_5 = arith.constant 3.000000e+00 : f32
    %6 = vector.broadcast %cst_5 : f32 to vector<8x128xf32>
    %7 = arith.addf %5, %6 : vector<8x128xf32>
    %cst_6 = arith.constant 0.000000e+00 : f32
    %cst_7 = arith.constant 6.000000e+00 : f32
    %8 = vector.broadcast %cst_6 : f32 to vector<8x128xf32>
    %9 = arith.maximumf %8, %7 : vector<8x128xf32>
    %10 = vector.broadcast %cst_7 : f32 to vector<8x128xf32>
    %11 = arith.minimumf %10, %9 : vector<8x128xf32>
    %12 = arith.mulf %5, %11 : vector<8x128xf32>
    %cst_8 = arith.constant 0.166666672 : f32
    %13 = vector.broadcast %cst_8 : f32 to vector<8x128xf32>
    %14 = arith.mulf %12, %13 : vector<8x128xf32>
    %15 = arith.truncf %14 : vector<8x128xf32> to vector<8x128xbf16>
    %c0_9 = arith.constant 0 : index
    %c0_10 = arith.constant 0 : index
    %16 = vector.load %arg6[%c0_9, %c0_10] : memref<128x128xbf16, #tpu.memory_space<vmem>>, vector<128x128xbf16>
    %cst_11 = arith.constant dense<0.000000e+00> : vector<8x128xf32>
    %17 = tpu.matmul %15, %16, %cst_11 {dimension_numbers = #tpu.dot_dimension_numbers<[1], [0], [0], [1], [0, 0, 1, 1], [], []>} : vector<8x128xbf16>, vector<128x128xbf16>, vector<8x128xf32> -> vector<8x128xf32>
    %c0_12 = arith.constant 0 : index
    %c0_13 = arith.constant 0 : index
    %18 = vector.load %arg7[%c0_12, %c0_13] : memref<1x128xf32, #tpu.memory_space<vmem>>, vector<1x128xf32>
    %19 = vector.broadcast %18 : vector<1x128xf32> to vector<8x128xf32>
    %20 = arith.addf %17, %19 : vector<8x128xf32>
    %c0_14 = arith.constant 0 : index
    %c0_15 = arith.constant 0 : index
    %21 = vector.load %arg8[%c0_14, %c0_15] : memref<8x128xf32, #tpu.memory_space<vmem>>, vector<8x128xf32>
    tpu.vector_store %arg8[%c0_14, %c0_15], %20 {strides = array<i32>} : memref<8x128xf32, #tpu.memory_space<vmem>>, vector<8x128xf32>,
    return
  }
  func.func @transform_0(%arg0: i32, %arg1: i32, %arg2: i32) -> (i32, i32) {
    %c0_i32 = arith.constant 0 : i32
    %c0_i32_0 = arith.constant 0 : i32
    return %arg0, %c0_i32 : i32, i32
  }
  func.func @transform_1(%arg0: i32, %arg1: i32, %arg2: i32) -> (i32, i32) {
    %c0_i32 = arith.constant 0 : i32
    %c0_i32_0 = arith.constant 0 : i32
    return %c0_i32, %arg2 : i32, i32
  }
  func.func @transform_2(%arg0: i32, %arg1: i32, %arg2: i32) -> (i32, i32) {
    %c0_i32 = arith.constant 0 : i32
    %c0_i32_0 = arith.constant 0 : i32
    return %c0_i32, %arg2 : i32, i32
  }
  func.func @transform_3(%arg0: i32, %arg1: i32, %arg2: i32) -> (i32, i32) {
    %c0_i32 = arith.constant 0 : i32
    return %arg2, %arg1 : i32, i32
  }
  func.func @transform_4(%arg0: i32, %arg1: i32, %arg2: i32) -> (i32, i32) {
    %c0_i32 = arith.constant 0 : i32
    %c0_i32_0 = arith.constant 0 : i32
    return %c0_i32, %arg1 : i32, i32
  }
  func.func @transform_5(%arg0: i32, %arg1: i32, %arg2: i32) -> (i32, i32) {
    %c0_i32 = arith.constant 0 : i32
    return %arg0, %arg1 : i32, i32
  }
}

</mosaic_0001>

<bundles_post_ra>
// kernel: tpu_custom_call.1
= control target key start
LH: loop header
LB: loop body
LE: loop exit
PB: predicated region body
PF: predicated region fallthrough
CT: control target
= control target key end

     0   :  { %6 = vsyncpa [#allocation3], 0  ;;  %s124_s0 = inlined_call_operand.hbm [shape: f32[8,128], index: 0, kind: input, shape index: {}]   ;;  %s125_s1 = inlined_call_operand.hbm [shape: f32[8,128], index: 1, kind: output, shape index: {}]  }
   0x1   :  { %7 = vsyncpa [#allocation4], 0  ;;  %s88_s6 = smov [#allocation2]   ;;  %s40_s10 = scalar_lea.hbm %s124_s0, 128 }
   0x2   :  { %s14_s7 = sshll.u32 %s88_s6, 4  ;;  %p41_p0 = scmp.ne.s32.totalorder %s124_s0, %s40_s10  ;;  %s15_s7 = int_to_ptr.vmem [resolvable:$true] %s14_s7 }
   0x3   :  { %p44_p1 = scmp.lt.u32.totalorder %s40_s10, %s124_s0 }
   0x5   :  { %p46_p2 = pnand %p44_p1, %p41_p0 }
   0x7   :  { %49 = shalt.err (!%p46_p2)
}
   0x8   :  { %s50_s15 = scalar_lea.vmem %s15_s7, 128  ;;  %p55_p4 = scmp.lt.s32.totalorder %s15_s7, %s15_s7 }
   0x9   :  { %p51_p3 = scmp.ne.s32.totalorder %s15_s7, %s50_s15  ;;  %p56_p5 = scmp.lt.s32.totalorder %s50_s15, %s50_s15 }
   0xb   :  { %p57_p6 = por %p56_p5, %p55_p4 }
   0xd   :  { %p58_p7 = pnand %p57_p6, %p51_p3 }
   0xf   :  { %61 = shalt.err (!%p58_p7)
}
  0x10   :  { %17 = dma.hbm_to_vmem [thread:$0]  %s124_s0, 128, %s15_s7, [#allocation3]  }
  0x11   :  { %84 = dma.done.wait [#allocation3], 128  }
  0x12   :  { %85 = vsyncadd [#allocation3], 4294967168  ;;  %s89_s18 = smov [#allocation5]   ;;  %v21_v0 = vld [vmem:[#allocation2] sm:$0xff] }
  0x13   :  { %s29_s19 = sshll.u32 %s89_s18, 4  ;;  %22 = vst [vmem:[#allocation5] sm:$0xff] %v21_v0  ;;  %s30_s19 = int_to_ptr.vmem [resolvable:$true] %s29_s19 }
  0x14   :  { %s62_s20 = scalar_lea.vmem %s30_s19, 128  ;;  %p67_p9 = scmp.lt.s32.totalorder %s30_s19, %s30_s19 }
  0x15   :  { %p63_p8 = scmp.ne.s32.totalorder %s30_s19, %s62_s20  ;;  %p68_p10 = scmp.lt.s32.totalorder %s62_s20, %s62_s20 }
  0x17   :  { %p69_p11 = por %p68_p10, %p67_p9 }
  0x19   :  { %p70_p12 = pnand %p69_p11, %p63_p8 }
  0x1b   :  { %73 = shalt.err (!%p70_p12)
}
  0x1c   :  { %s74_s23 = scalar_lea.hbm %s125_s1, 128 }
  0x1d   :  { %p75_p13 = scmp.ne.s32.totalorder %s125_s1, %s74_s23  ;;  %p78_p0 = scmp.lt.u32.totalorder %s74_s23, %s125_s1 }
  0x1f   :  { %p80_p1 = pnand %p78_p0, %p75_p13 }
  0x21   :  { %83 = shalt.err (!%p80_p1)
}
  0x22   :  { %32 = dma.vmem_to_hbm [thread:$0]  %s30_s19, 128, %s125_s1, [#allocation4]  }
  0x23   :  { %86 = dma.done.wait [#allocation4], 128  }
  0x24   :  { %87 = vsyncadd [#allocation4], 4294967168 }
  0x25   :  { %36 = vsyncpa [#allocation3], 1 }
  0x26   :  { %37 = vsyncpa [#allocation4], 1 }

// kernel: tpu_custom_call.1
= control target key start
LH: loop header
LB: loop body
LE: loop exit
PB: predicated region body
PF: predicated region fallthrough
CT: control target
= control target key end

     0   :  { %10 = vsyncpa [#allocation3], 0  ;;  %s513_s0 = inlined_call_operand.hbm [shape: bf16[8,16], index: 0, kind: input, shape index: {}]   ;;  %s514_s1 = inlined_call_operand.hbm [shape: bf16[16,128], index: 1, kind: input, shape index: {}]   ;;  %s515_s2 = inlined_call_operand.vmem [shape: f32[1,128], index: 2, kind: input, shape index: {}]   ;;  %s516_s3 = inlined_call_operand.hbm [shape: bf16[128,128], index: 3, kind: input, shape index: {}]   ;;  %s517_s4 = inlined_call_operand.vmem [shape: f32[1,128], index: 4, kind: input, shape index: {}]   ;;  %s518_s5 = inlined_call_operand.hbm [shape: f32[8,128], index: 5, kind: output, shape index: {}]  }
   0x1   :  { %11 = vsyncpa [#allocation6], 0 }
   0x2   :  { %12 = vsyncpa [#allocation4], 0  ;;  %s415_s18 = smov [#allocation5]   ;;  %s321_s22 = scalar_lea.hbm %s514_s1, 128 }
   0x3   :  { %s28_s19 = sshll.u32 %s415_s18, 4  ;;  %p322_p0 = scmp.ne.s32.totalorder %s514_s1, %s321_s22  ;;  %s29_s19 = int_to_ptr.vmem [resolvable:$true] %s28_s19 }
   0x4   :  { %p325_p1 = scmp.lt.u32.totalorder %s321_s22, %s514_s1 }
   0x6   :  { %p327_p2 = pnand %p325_p1, %p322_p0 }
   0x8   :  { %330 = shalt.err (!%p327_p2)
}
   0x9   :  { %s331_s27 = scalar_lea.vmem %s29_s19, 128  ;;  %p336_p4 = scmp.lt.s32.totalorder %s29_s19, %s29_s19 }
   0xa   :  { %p332_p3 = scmp.ne.s32.totalorder %s29_s19, %s331_s27  ;;  %p337_p5 = scmp.lt.s32.totalorder %s331_s27, %s331_s27 }
   0xc   :  { %p338_p6 = por %p337_p5, %p336_p4 }
   0xe   :  { %p339_p7 = pnand %p338_p6, %p332_p3 }
  0x10   :  { %342 = shalt.err (!%p339_p7)
}
  0x11   :  { %s416_s28 = smov 64   ;;  %s417_s29 = smov 4  }
  0x12   :  { %34 = dma.hbm_to_vmem [thread:$0]  %s514_s1, 128, %s29_s19, [#allocation6], %s416_s28, %s416_s28, %s417_s29  }
  0x13   :  { %s418_s7 = smov [#allocation2]   ;;  %s419_s9 = smov [#allocation7]  }
  0x14   :  { %s19_s8 = sshll.u32 %s418_s7, 4  ;;  %s42_s10 = sshll.u32 %s419_s9, 4  ;;  %s20_s8 = int_to_ptr.vmem [resolvable:$true] %s19_s8  ;;  %s43_s10 = int_to_ptr.vmem [resolvable:$true] %s42_s10 }
  0x15   :  { %s343_s13 = scalar_lea.hbm %s513_s0, 64 }
  0x16   :  { %p344_p8 = scmp.ne.s32.totalorder %s513_s0, %s343_s13  ;;  %p347_p9 = scmp.lt.u32.totalorder %s343_s13, %s513_s0 }
  0x18   :  { %p349_p10 = pnand %p347_p9, %p344_p8 }
  0x1a   :  { %352 = shalt.err (!%p349_p10)
}
  0x1b   :  { %s353_s1 = scalar_lea.vmem %s20_s8, 64  ;;  %p358_p12 = scmp.lt.s32.totalorder %s20_s8, %s20_s8 }
  0x1c   :  { %p354_p11 = scmp.ne.s32.totalorder %s20_s8, %s353_s1  ;;  %p359_p13 = scmp.lt.s32.totalorder %s353_s1, %s353_s1 }
  0x1e   :  { %p360_p0 = por %p359_p13, %p358_p12 }
  0x20   :  { %p361_p1 = pnand %p360_p0, %p354_p11 }
  0x22   :  { %364 = shalt.err (!%p361_p1)
}
  0x23   :  { %22 = dma.hbm_to_vmem [thread:$0]  %s513_s0, 64, %s20_s8, [#allocation3]  }
  0x24   :  { %s365_s22 = scalar_lea.hbm %s516_s3, 1024 }
  0x25   :  { %p366_p2 = scmp.ne.s32.totalorder %s516_s3, %s365_s22  ;;  %p369_p3 = scmp.lt.u32.totalorder %s365_s22, %s516_s3 }
  0x27   :  { %p371_p4 = pnand %p369_p3, %p366_p2 }
  0x29   :  { %374 = shalt.err (!%p371_p4)
}
  0x2a   :  { %s375_s27 = scalar_lea.vmem %s43_s10, 1024  ;;  %p380_p6 = scmp.lt.s32.totalorder %s43_s10, %s43_s10 }
  0x2b   :  { %p376_p5 = scmp.ne.s32.totalorder %s43_s10, %s375_s27  ;;  %p381_p7 = scmp.lt.s32.totalorder %s375_s27, %s375_s27 }
  0x2d   :  { %p382_p8 = por %p381_p7, %p380_p6 }
  0x2f   :  { %p383_p9 = pnand %p382_p8, %p376_p5 }
  0x31   :  { %386 = shalt.err (!%p383_p9)
}
  0x32   :  { %48 = dma.hbm_to_vmem [thread:$0]  %s516_s3, 1024, %s43_s10, [#allocation6], %s416_s28, %s416_s28, %s417_s29  }
  0x33   :  { %409 = dma.done.wait [#allocation3], 64  }
  0x34   :  { %410 = vsyncadd [#allocation3], 4294967232 }
  0x35   :  { %411 = dma.done.wait [#allocation6], 1152  }
  0x36   :  { %412 = vsyncadd [#allocation6], 4294966144  ;;  %v420_v0 = vmov 0.0   ;;  %vm421_vm0 = vmmov 0   ;;  %v312_v1 = vld [vmem:[#allocation5] sm:$0xff]   ;;  %vm77_vm1 = vcmask 130048  }
  0x37   :  { %278 = vmatprep.subr.bf16.mxu0 %v420_v0  ;;  %280 = vmatprep.mubr.msk.bf16.mxu0 %vm421_vm0, %v420_v0  ;;  %v61_v2 = vld [vmem:[#allocation2] sm:$0xf]  ;;  %v313_v3 = vld [vmem:[#allocation7] sm:$0xff]   ;;  %v314_v4 = vld [vmem:[#allocation7 + $0x8] sm:$0xff]   ;;  %s422_s7 = smov [#allocation8]  }
  0x38   :  { %284 = vmatprep.subr.bf16.mxu1 %v420_v0  ;;  %300 = vmatprep.mubr.msk.bf16.mxu1 %vm421_vm0, %v420_v0  ;;  %v315_v5 = vld [vmem:[#allocation7 + $0x10] sm:$0xff]   ;;  %v316_v6 = vld [vmem:[#allocation7 + $0x18] sm:$0xff]   ;;  %v317_v7 = vld [vmem:[#allocation7 + $0x20] sm:$0xff]   ;;  %s245_s8 = sshll.u32 %s422_s7, 4  ;;  %s246_s8 = int_to_ptr.vmem [resolvable:$true] %s245_s8 }
  0x39   :  { %279 = vmatpush3.bf16.msra.mxu0 %v312_v1  ;;  %285 = vmatpush3.bf16.msra.mxu1 %v313_v3  ;;  %v318_v8 = vld [vmem:[#allocation7 + $0x28] sm:$0xff]   ;;  %v319_v9 = vld [vmem:[#allocation7 + $0x30] sm:$0xff]   ;;  %v320_v10 = vld [vmem:[#allocation7 + $0x38] sm:$0xff]   ;;  %p392_p11 = scmp.lt.s32.totalorder %s246_s8, %s246_s8 }
  0x3a   :  { %286 = vmatprep.subr.bf16.mxu1 %v420_v0  ;;  %v255_v11 = vld [vmem:[%s515_s2] ss:$0 sm:$0xff]  ;;  %s387_s2 = scalar_lea.vmem %s246_s8, 128 }
  0x3b   :  { %v258_v23 = vld [vmem:[%s517_s4] ss:$0 sm:$0xff]  ;;  %p388_p10 = scmp.ne.s32.totalorder %s246_s8, %s387_s2  ;;  %p393_p12 = scmp.lt.s32.totalorder %s387_s2, %s387_s2 }
  0x3c   :  { %281 = vmatmul.mubr.msk.bf16.vlgmr.msra.gmra.mrb[0].mxu0 %vm77_vm1, %v61_v2 }
  0x3d   :  { %287 = vmatpush3.bf16.msra.mxu1 %v314_v4  ;;  %p394_p13 = por %p393_p12, %p392_p11 }
  0x3e   :  { %288 = vmatprep.subr.bf16.mxu1 %v420_v0 }
  0x3f   :  { %p395_p0 = pnand %p394_p13, %p388_p10 }
  0x41   :  { %289 = vmatpush3.bf16.msra.mxu1 %v315_v5 }
  0x42   :  { %290 = vmatprep.subr.bf16.mxu1 %v420_v0 }
  0x45   :  { %291 = vmatpush3.bf16.msra.mxu1 %v316_v6 }
  0x46   :  { %292 = vmatprep.subr.bf16.mxu1 %v420_v0 }
  0x49   :  { %293 = vmatpush3.bf16.msra.mxu1 %v317_v7 }
  0x4a   :  { %294 = vmatprep.subr.bf16.mxu1 %v420_v0 }
  0x4d   :  { %295 = vmatpush3.bf16.msra.mxu1 %v318_v8 }
  0x4e   :  { %296 = vmatprep.subr.bf16.mxu1 %v420_v0 }
  0x51   :  { %297 = vmatpush3.bf16.msra.mxu1 %v319_v9 }
  0x52   :  { %298 = vmatprep.subr.bf16.mxu1 %v420_v0 }
  0x55   :  { %299 = vmatpush3.bf16.msra.mxu1 %v320_v10 }
 0x10f   :  { %v115_v12 = vpop.f32.mrb[0].mxu0 }
 0x110   :  { %v116_v13 = vadd.f32 %v255_v11, %v115_v12  ;;  %v282_v14 = vpop.f32.mrb[1].mxu0 }
 0x111   :  { %v118_v15 = vpop.f32.mrb[2].mxu0 }
 0x112   :  { %v121_v16 = vadd.f32 3.0, %v116_v13  ;;  %v283_v17 = vpop.f32.mrb[3].mxu0 }
 0x114   :  { %v122_v18 = vmax.f32 %v121_v16, 0.0 }
 0x116   :  { %v123_v19 = vmin.f32 %v122_v18, 6.0 }
 0x118   :  { %v124_v20 = vmul.f32 %v123_v19, %v116_v13 }
 0x11a   :  { %v125_v21 = vmul.f32 0.16666667, %v124_v20 }
 0x11c   :  { %v126_v22 = vpack.c.bf16 %v125_v21, %v125_v21 }
 0x11e   :  { %301 = vmatmul.mubr.bf16.vlgmr.msra.gmra.mrb[0].mxu1 %v126_v22 }
 0x1f1   :  { %v232_v24 = vpop.f32.mrb[0].mxu1 }
 0x1f2   :  { %v233_v25 = vadd.f32 %v258_v23, %v232_v24  ;;  %v302_v26 = vpop.f32.mrb[1].mxu1 }
 0x1f3   :  { %v235_v27 = vpop.f32.mrb[2].mxu1 }
 0x1f4   :  { %238 = vst [vmem:[#allocation8] sm:$0xff] %v233_v25  ;;  %v303_v28 = vpop.f32.mrb[3].mxu1 }
 0x1f5   :  { %398 = shalt.err (!%p395_p0)
}
 0x1f6   :  { %s399_s4 = scalar_lea.hbm %s518_s5, 128 }
 0x1f7   :  { %p400_p1 = scmp.ne.s32.totalorder %s518_s5, %s399_s4  ;;  %p403_p2 = scmp.lt.u32.totalorder %s399_s4, %s518_s5 }
 0x1f9   :  { %p405_p3 = pnand %p403_p2, %p400_p1 }
 0x1fb   :  { %408 = shalt.err (!%p405_p3)
}
 0x1fc   :  { %248 = dma.vmem_to_hbm [thread:$0]  %s246_s8, 128, %s518_s5, [#allocation4]  }
 0x1fd   :  { %413 = dma.done.wait [#allocation4], 128  }
 0x1fe   :  { %414 = vsyncadd [#allocation4], 4294967168 }
 0x1ff   :  { %252 = vsyncpa [#allocation3], 1 }
 0x200   :  { %253 = vsyncpa [#allocation6], 1 }
 0x201   :  { %254 = vsyncpa [#allocation4], 1 }

</bundles_post_ra>
